<compile_context>
chip_gen: v6e
topology: v6e:2x2x1
jax: 0.10.0
libtpu: 0.0.40
codegen_flags: <defaults>
</compile_context>

<pallas_src>
import functools
import math

import jax
import jax.numpy as jnp
from jax.experimental import pallas as pl
from jax.experimental.pallas import tpu as pltpu


def _round_up(x, m):
    return (x + m - 1) // m * m


def _pick_tile(n_pad, candidates, prefer_multi):
    """Largest candidate tile that divides n_pad (optionally leaving >=2 tiles)."""
    divs = [c for c in candidates if n_pad % c == 0]
    if not divs:
        return n_pad
    if prefer_multi:
        multi = [c for c in divs if n_pad // c >= 2]
        if multi:
            return multi[0]
    return divs[0]


def _vmem_limit(req_bytes):
    # Leave headroom; stay well inside v7x's 64 MiB physical VMEM per TC.
    return int(min(max(req_bytes + (4 << 20), 16 << 20), 56 << 20))


# ----------------------------- phase 1: support = relu(X @ W) ----------------
def support_kernel(x_ref, w_ref, s_ref):
    acc = jnp.dot(x_ref[...], w_ref[...], preferred_element_type=jnp.float32)
    s_ref[...] = jnp.maximum(acc, 0.0).astype(s_ref.dtype)


# ----------------------------- phase 2: out = adj @ support + bias -----------
def aggregate_kernel_resident(adj_ref, s_ref, b_ref, o_ref, acc_ref, *, tk):
    """support is a single resident (n_pad, fo_pad) VMEM block; slice per k."""
    k = pl.program_id(1)

    @pl.when(k == 0)
    def _():
        acc_ref[...] = jnp.zeros_like(acc_ref)

    adj_t = adj_ref[...].astype(jnp.bfloat16)  # in-kernel cast: VPU, DMA-bound anyway
    s_t = s_ref[pl.ds(pl.multiple_of(k * tk, tk), tk), :]
    acc_ref[...] += jnp.dot(adj_t, s_t, preferred_element_type=jnp.float32)

    @pl.when(k == pl.num_programs(1) - 1)
    def _():
        # bias added exactly once, in the finalize branch
        o_ref[...] = (acc_ref[...] + b_ref[...]).astype(o_ref.dtype)


def aggregate_kernel_streamed(adj_ref, s_ref, b_ref, o_ref, acc_ref):
    """Fallback: support streamed per-k (used only if resident copy won't fit)."""
    k = pl.program_id(1)

    @pl.when(k == 0)
    def _():
        acc_ref[...] = jnp.zeros_like(acc_ref)

    adj_t = adj_ref[...].astype(jnp.bfloat16)
    acc_ref[...] += jnp.dot(adj_t, s_ref[...], preferred_element_type=jnp.float32)

    @pl.when(k == pl.num_programs(1) - 1)
    def _():
        o_ref[...] = (acc_ref[...] + b_ref[...]).astype(o_ref.dtype)


def _pad2(a, rows, cols, dtype):
    """Pad/cast to (rows, cols) of dtype; no-op (no copy) if already matching."""
    if a.shape == (rows, cols) and a.dtype == jnp.dtype(dtype):
        return a
    return jnp.zeros((rows, cols), dtype).at[: a.shape[0], : a.shape[1]].set(
        a.astype(dtype))


def graph_convolution(x, adj, weight, bias):
    """x: [N, F_in], adj: [N, N] (dense), weight: [F_in, F_out], bias: [F_out]|None."""
    n, f_in = x.shape
    f_out = weight.shape[1]

    # Lane/sublane-dense padding; N padding decoupled from the tile size.
    n_pad = _round_up(n, 256)
    fi_pad = _round_up(f_in, 128)
    fo_pad = _round_up(f_out, 128)

    cdt = jnp.bfloat16  # MXU input dtype; accumulation stays f32

    # X / W are small: cast+pad to bf16 in the wrapper.
    x_p = _pad2(x, n_pad, fi_pad, cdt)
    w_p = _pad2(weight, fi_pad, fo_pad, cdt)
    # adj is the O(N^2) stream: keep its native dtype, pad only if needed,
    # cast per-tile inside the kernel (no materialized bf16 copy).
    adj_p = _pad2(adj, n_pad, n_pad, adj.dtype)
    adj_bytes = jnp.dtype(adj_p.dtype).itemsize
    if bias is None:
        b_p = jnp.zeros((1, fo_pad), jnp.float32)
    else:
        b_p = jnp.zeros((1, fo_pad), jnp.float32).at[0, :f_out].set(
            bias.astype(jnp.float32))

    # ---- phase 1: support = relu(X @ W), row-tiled, computed once ----------
    tm_s = _pick_tile(n_pad, (2048, 1024, 512, 256), prefer_multi=True)
    p1_req = (2 * tm_s * fi_pad * 2          # x double-buffer (bf16)
              + 2 * fi_pad * fo_pad * 2      # resident W
              + 2 * tm_s * fo_pad * 2)       # out double-buffer (bf16)
    support = pl.pallas_call(
        support_kernel,
        out_shape=jax.ShapeDtypeStruct((n_pad, fo_pad), cdt),
        grid_spec=pltpu.PrefetchScalarGridSpec(
            num_scalar_prefetch=0,
            grid=(n_pad // tm_s,),
            in_specs=[
                pl.BlockSpec((tm_s, fi_pad), lambda i: (i, 0)),
                pl.BlockSpec((fi_pad, fo_pad), lambda i: (0, 0)),
            ],
            out_specs=pl.BlockSpec((tm_s, fo_pad), lambda i: (i, 0)),
        ),
        compiler_params=pltpu.CompilerParams(
            dimension_semantics=("parallel",),
            vmem_limit_bytes=_vmem_limit(p1_req)),
        cost_estimate=pl.CostEstimate(
            flops=2 * n_pad * fi_pad * fo_pad,
            transcendentals=0,
            bytes_accessed=(n_pad * fi_pad + fi_pad * fo_pad + n_pad * fo_pad) * 2),
    )(x_p, w_p)

    # ---- phase 2: output = adj @ support + bias, (row, k) tiled ------------
    # Row tile: keep >=2 tiles when possible so the parallel axis can shard
    # across v7x's 2 TensorCores.  k tile: as large as divisibility allows.
    tm = _pick_tile(n_pad, (1024, 512, 256), prefer_multi=True)
    tk = _pick_tile(n_pad, (1024, 512, 256), prefer_multi=False)

    # Resident-support VMEM accounting (count 2 buffers conservatively).
    p2_resident_req = (2 * tm * tk * adj_bytes      # adj double-buffer (native dtype)
                       + 2 * n_pad * fo_pad * 2     # resident support (bf16)
                       + 2 * tm * fo_pad * 4        # out double-buffer (f32)
                       + tm * fo_pad * 4            # f32 accumulator scratch
                       + 2 * 8 * fo_pad * 4)        # bias
    use_resident = p2_resident_req <= (44 << 20)

    if use_resident:
        kernel = functools.partial(aggregate_kernel_resident, tk=tk)
        support_spec = pl.BlockSpec((n_pad, fo_pad), lambda i, k: (0, 0))
        p2_req = p2_resident_req
        support_hbm_bytes = n_pad * fo_pad * 2                     # read once
    else:
        kernel = aggregate_kernel_streamed
        support_spec = pl.BlockSpec((tk, fo_pad), lambda i, k: (k, 0))
        p2_req = (2 * tm * tk * adj_bytes + 2 * tk * fo_pad * 2
                  + 2 * tm * fo_pad * 4 + tm * fo_pad * 4 + 2 * 8 * fo_pad * 4)
        support_hbm_bytes = (n_pad // tm) * n_pad * fo_pad * 2     # re-streamed per i

    out = pl.pallas_call(
        kernel,
        out_shape=jax.ShapeDtypeStruct((n_pad, fo_pad), jnp.float32),
        grid_spec=pltpu.PrefetchScalarGridSpec(
            num_scalar_prefetch=0,
            grid=(n_pad // tm, n_pad // tk),
            in_specs=[
                pl.BlockSpec((tm, tk), lambda i, k: (i, k)),    # adj tile (native dtype)
                support_spec,                                   # support (resident/streamed)
                pl.BlockSpec((1, fo_pad), lambda i, k: (0, 0)), # bias (whole)
            ],
            out_specs=pl.BlockSpec((tm, fo_pad), lambda i, k: (i, 0)),
            scratch_shapes=[pltpu.VMEM((tm, fo_pad), jnp.float32)],
        ),
        compiler_params=pltpu.CompilerParams(
            dimension_semantics=("parallel", "arbitrary"),
            vmem_limit_bytes=_vmem_limit(p2_req)),
        cost_estimate=pl.CostEstimate(
            flops=2 * n_pad * n_pad * fo_pad,
            transcendentals=0,
            bytes_accessed=(n_pad * n_pad * adj_bytes        # adj read once
                            + support_hbm_bytes              # support
                            + n_pad * fo_pad * 4             # output write
                            + fo_pad * 4)),                  # bias
    )(adj_p, support, b_p)

    return out[:n, :f_out]


if __name__ == "__main__":
    # Small shapes consistent with the module: N nodes, in_features -> out_features.
    N, F_IN, F_OUT = 8, 16, 32

    key = jax.random.PRNGKey(0)
    kx, kadj, kw, kb = jax.random.split(key, 4)

    # Deterministic parameter init matching reset_parameters():
    # uniform(-stdv, stdv) with stdv = 1/sqrt(out_features)
    stdv = 1.0 / math.sqrt(F_OUT)
    weight = jax.random.uniform(kw, (F_IN, F_OUT), jnp.float32, minval=-stdv, maxval=stdv)
    bias = jax.random.uniform(kb, (F_OUT,), jnp.float32, minval=-stdv, maxval=stdv)

    # Example inputs: node features and a (dense) row-normalized adjacency matrix.
    x = jax.random.normal(kx, (N, F_IN), jnp.float32)
    adj_raw = (jax.random.uniform(kadj, (N, N), jnp.float32) > 0.5).astype(jnp.float32)
    adj = adj_raw + jnp.eye(N, dtype=jnp.float32)
    adj = adj / jnp.sum(adj, axis=1, keepdims=True)

    out = graph_convolution(x, adj, weight, bias)
    out = jax.block_until_ready(out)

    # Reference 1: same bf16 input quantization as the kernel (tight check).
    def q(a):
        return a.astype(jnp.bfloat16).astype(jnp.float32)

    support_ref = jnp.maximum(q(x) @ q(weight), 0.0)
    ref_q = q(adj) @ q(support_ref) + bias[None, :]

    # Reference 2: full f32 math (loose check — bounds bf16 quantization error).
    ref_f32 = adj @ jnp.maximum(x @ weight, 0.0) + bias[None, :]

    assert out.shape == (N, F_OUT)
    assert jnp.allclose(out, ref_q, atol=1e-2, rtol=1e-2)
    assert jnp.allclose(out, ref_f32, atol=5e-2, rtol=5e-2)

    print("KERNEL_OK")
</pallas_src>

<mosaic_0001>
module attributes {stable_mosaic.version = 11 : i64} {
  func.func @support_kernel(%arg0: i32, %arg1: memref<256x128xbf16, #tpu.memory_space<vmem>>, %arg2: memref<128x128xbf16, #tpu.memory_space<vmem>>, %arg3: memref<256x128xbf16, #tpu.memory_space<vmem>>) attributes {dimension_semantics = [#tpu.dimension_semantics<parallel>], iteration_bounds = array<i64: 1>, scalar_prefetch = 0 : i64, scratch_operands = 0 : i64, tpu.core_type = #tpu.core_type<tc>, window_params = [{transform_indices = @transform_0, window_bounds = array<i64: 256, 128>}, {pipeline_mode = #tpu.pipeline_mode<synchronous>, transform_indices = @transform_1, window_bounds = array<i64: 128, 128>}, {transform_indices = @transform_2, window_bounds = array<i64: 256, 128>}]} {
    %c0 = arith.constant 0 : index
    %c0_0 = arith.constant 0 : index
    %0 = vector.load %arg1[%c0, %c0_0] : memref<256x128xbf16, #tpu.memory_space<vmem>>, vector<256x128xbf16>
    %c0_1 = arith.constant 0 : index
    %c0_2 = arith.constant 0 : index
    %1 = vector.load %arg2[%c0_1, %c0_2] : memref<128x128xbf16, #tpu.memory_space<vmem>>, vector<128x128xbf16>
    %cst = arith.constant dense<0.000000e+00> : vector<256x128xf32>
    %2 = tpu.matmul %0, %1, %cst {dimension_numbers = #tpu.dot_dimension_numbers<[1], [0], [0], [1], [0, 0, 1, 1], [], []>} : vector<256x128xbf16>, vector<128x128xbf16>, vector<256x128xf32> -> vector<256x128xf32>
    %cst_3 = arith.constant 0.000000e+00 : f32
    %3 = vector.broadcast %cst_3 : f32 to vector<256x128xf32>
    %4 = arith.maximumf %2, %3 : vector<256x128xf32>
    %5 = arith.truncf %4 : vector<256x128xf32> to vector<256x128xbf16>
    %c0_4 = arith.constant 0 : index
    %c0_5 = arith.constant 0 : index
    %6 = vector.load %arg3[%c0_4, %c0_5] : memref<256x128xbf16, #tpu.memory_space<vmem>>, vector<256x128xbf16>
    tpu.vector_store %arg3[%c0_4, %c0_5], %5 {strides = array<i32>} : memref<256x128xbf16, #tpu.memory_space<vmem>>, vector<256x128xbf16>,
    return
  }
  func.func @transform_0(%arg0: i32) -> (i32, i32) {
    %c0_i32 = arith.constant 0 : i32
    %c0_i32_0 = arith.constant 0 : i32
    return %arg0, %c0_i32 : i32, i32
  }
  func.func @transform_1(%arg0: i32) -> (i32, i32) {
    %c0_i32 = arith.constant 0 : i32
    %c0_i32_0 = arith.constant 0 : i32
    %c0_i32_1 = arith.constant 0 : i32
    return %c0_i32, %c0_i32_0 : i32, i32
  }
  func.func @transform_2(%arg0: i32) -> (i32, i32) {
    %c0_i32 = arith.constant 0 : i32
    %c0_i32_0 = arith.constant 0 : i32
    return %arg0, %c0_i32 : i32, i32
  }
}

</mosaic_0001>

<bundles_post_ra>
// kernel: tpu_custom_call.1
= control target key start
LH: loop header
LB: loop body
LE: loop exit
PB: predicated region body
PF: predicated region fallthrough
CT: control target
= control target key end

     0   :  { %7 = vsyncpa [#allocation3], 0  ;;  %s1008_s0 = inlined_call_operand.hbm [shape: bf16[256,128], index: 0, kind: input, shape index: {}]   ;;  %s1009_s1 = inlined_call_operand.hbm [shape: bf16[128,128], index: 1, kind: input, shape index: {}]   ;;  %s1010_s2 = inlined_call_operand.hbm [shape: bf16[256,128], index: 2, kind: output, shape index: {}]  }
   0x1   :  { %8 = vsyncpa [#allocation6], 0 }
   0x2   :  { %9 = vsyncpa [#allocation4], 0  ;;  %s970_s9 = smov [#allocation2]  }
   0x3   :  { %s15_s10 = sshll.u32 %s970_s9, 4  ;;  %s16_s10 = int_to_ptr.vmem [resolvable:$true] %s15_s10 }
   0x4   :  { %s912_s11 = scalar_lea.vmem %s16_s10, 2048  ;;  %p917_p1 = scmp.lt.s32.totalorder %s16_s10, %s16_s10 }
   0x5   :  { %p913_p0 = scmp.ne.s32.totalorder %s16_s10, %s912_s11  ;;  %p918_p2 = scmp.lt.s32.totalorder %s912_s11, %s912_s11 }
   0x7   :  { %p919_p3 = por %p918_p2, %p917_p1 }
   0x9   :  { %p920_p4 = pnand %p919_p3, %p913_p0 }
   0xb   :  { %923 = shalt.err (!%p920_p4)
}
   0xc   :  { %s971_s12 = smov 64   ;;  %s972_s13 = smov 4  }
   0xd   :  { %21 = dma.hbm_to_vmem [thread:$0]  %s1008_s0, 2048, %s16_s10, [#allocation3], %s971_s12, %s971_s12, %s972_s13  }
   0xe   :  { %s973_s16 = smov [#allocation5]  }
   0xf   :  { %s27_s17 = sshll.u32 %s973_s16, 4  ;;  %s28_s17 = int_to_ptr.vmem [resolvable:$true] %s27_s17 }
  0x10   :  { %s932_s18 = scalar_lea.vmem %s28_s17, 1024  ;;  %p937_p6 = scmp.lt.s32.totalorder %s28_s17, %s28_s17 }
  0x11   :  { %p933_p5 = scmp.ne.s32.totalorder %s28_s17, %s932_s18  ;;  %p938_p7 = scmp.lt.s32.totalorder %s932_s18, %s932_s18 }
  0x13   :  { %p939_p8 = por %p938_p7, %p937_p6 }
  0x15   :  { %p940_p9 = pnand %p939_p8, %p933_p5 }
  0x17   :  { %943 = shalt.err (!%p940_p9)
}
  0x18   :  { %33 = dma.hbm_to_vmem [thread:$0]  %s1009_s1, 1024, %s28_s17, [#allocation6], %s971_s12, %s971_s12, %s972_s13  }
  0x19   :  { %964 = dma.done.wait [#allocation3], 2048  }
  0x1a   :  { %965 = vsyncadd [#allocation3], 4294965248 }
  0x1b   :  { %966 = dma.done.wait [#allocation6], 1024  }
  0x1c   :  { %967 = vsyncadd [#allocation6], 4294966272  ;;  %v880_v0 = vld [vmem:[#allocation5 + $0x38] sm:$0xff]   ;;  %v881_v1 = vld [vmem:[#allocation5 + $0x30] sm:$0xff]   ;;  %s974_s0 = smov [#allocation7]  }
  0x1d   :  { %811 = vmatprep.subr.bf16.mxu0 %v880_v0  ;;  %859 = vmatprep.subr.bf16.mxu1 %v880_v0  ;;  %v882_v2 = vld [vmem:[#allocation5 + $0x28] sm:$0xff]   ;;  %v883_v3 = vld [vmem:[#allocation5 + $0x20] sm:$0xff]   ;;  %v884_v6 = vld [vmem:[#allocation5 + $0x18] sm:$0xff]   ;;  %s591_s1 = sshll.u32 %s974_s0, 4  ;;  %s592_s1 = int_to_ptr.vmem [resolvable:$true] %s591_s1 }
  0x1e   :  { %812 = vmatpush3.bf16.msra.mxu0 %v880_v0  ;;  %867 = vmatpush3.bf16.msra.mxu1 %v880_v0  ;;  %v888_v4 = vld [vmem:[#allocation2] sm:$0xff]   ;;  %v885_v7 = vld [vmem:[#allocation5 + $0x10] sm:$0xff]   ;;  %v886_v8 = vld [vmem:[#allocation5 + $0x8] sm:$0xff]   ;;  %s944_s21 = scalar_lea.vmem %s592_s1, 2048  ;;  %p949_p11 = scmp.lt.s32.totalorder %s592_s1, %s592_s1 }
  0x1f   :  { %813 = vmatprep.subr.bf16.mxu0 %v881_v1  ;;  %860 = vmatprep.subr.bf16.mxu1 %v881_v1  ;;  %v889_v5 = vld [vmem:[#allocation2 + $0x40] sm:$0xff]   ;;  %v890_v10 = vld [vmem:[#allocation2 + $0x8] sm:$0xff]   ;;  %v892_v12 = vld [vmem:[#allocation2 + $0x10] sm:$0xff]   ;;  %p945_p10 = scmp.ne.s32.totalorder %s592_s1, %s944_s21  ;;  %p950_p12 = scmp.lt.s32.totalorder %s944_s21, %s944_s21 }
  0x20   :  { %827 = vmatprep.mubr.bf16.mxu0 %v888_v4  ;;  %843 = vmatprep.mubr.bf16.mxu1 %v889_v5  ;;  %v887_v9 = vld [vmem:[#allocation5] sm:$0xff]   ;;  %v891_v11 = vld [vmem:[#allocation2 + $0x48] sm:$0xff]   ;;  %v893_v13 = vld [vmem:[#allocation2 + $0x50] sm:$0xff]  }
  0x21   :  { %v894_v14 = vld [vmem:[#allocation2 + $0x18] sm:$0xff]   ;;  %v896_v16 = vld [vmem:[#allocation2 + $0x20] sm:$0xff]   ;;  %v898_v18 = vld [vmem:[#allocation2 + $0x28] sm:$0xff]   ;;  %p951_p13 = por %p950_p12, %p949_p11 }
  0x22   :  { %814 = vmatpush3.bf16.msra.mxu0 %v881_v1  ;;  %868 = vmatpush3.bf16.msra.mxu1 %v881_v1  ;;  %v895_v15 = vld [vmem:[#allocation2 + $0x58] sm:$0xff]   ;;  %v897_v17 = vld [vmem:[#allocation2 + $0x60] sm:$0xff]   ;;  %v899_v19 = vld [vmem:[#allocation2 + $0x68] sm:$0xff]  }
  0x23   :  { %815 = vmatprep.subr.bf16.mxu0 %v882_v2  ;;  %861 = vmatprep.subr.bf16.mxu1 %v882_v2  ;;  %v900_v20 = vld [vmem:[#allocation2 + $0x30] sm:$0xff]   ;;  %v902_v22 = vld [vmem:[#allocation2 + $0x38] sm:$0xff]   ;;  %p952_p0 = pnand %p951_p13, %p945_p10 }
  0x24   :  { %v901_v21 = vld [vmem:[#allocation2 + $0x70] sm:$0xff]   ;;  %v903_v23 = vld [vmem:[#allocation2 + $0x78] sm:$0xff]  }
  0x26   :  { %816 = vmatpush3.bf16.msra.mxu0 %v882_v2  ;;  %869 = vmatpush3.bf16.msra.mxu1 %v882_v2 }
  0x27   :  { %817 = vmatprep.subr.bf16.mxu0 %v883_v3  ;;  %862 = vmatprep.subr.bf16.mxu1 %v883_v3 }
  0x2a   :  { %818 = vmatpush3.bf16.msra.mxu0 %v883_v3  ;;  %870 = vmatpush3.bf16.msra.mxu1 %v883_v3 }
  0x2b   :  { %819 = vmatprep.subr.bf16.mxu0 %v884_v6  ;;  %863 = vmatprep.subr.bf16.mxu1 %v884_v6 }
  0x2e   :  { %820 = vmatpush3.bf16.msra.mxu0 %v884_v6  ;;  %871 = vmatpush3.bf16.msra.mxu1 %v884_v6 }
  0x2f   :  { %821 = vmatprep.subr.bf16.mxu0 %v885_v7  ;;  %864 = vmatprep.subr.bf16.mxu1 %v885_v7 }
  0x32   :  { %822 = vmatpush3.bf16.msra.mxu0 %v885_v7  ;;  %872 = vmatpush3.bf16.msra.mxu1 %v885_v7 }
  0x33   :  { %823 = vmatprep.subr.bf16.mxu0 %v886_v8  ;;  %865 = vmatprep.subr.bf16.mxu1 %v886_v8 }
  0x36   :  { %824 = vmatpush3.bf16.msra.mxu0 %v886_v8  ;;  %873 = vmatpush3.bf16.msra.mxu1 %v886_v8 }
  0x37   :  { %825 = vmatprep.subr.bf16.mxu0 %v887_v9  ;;  %866 = vmatprep.subr.bf16.mxu1 %v887_v9 }
  0x3a   :  { %826 = vmatpush3.bf16.msra.mxu0 %v887_v9  ;;  %874 = vmatpush3.bf16.msra.mxu1 %v887_v9 }
  0x3d   :  { %828 = vmatmul.mubr.bf16.vlgmr.msra.gmra.mxu0 %v890_v10  ;;  %844 = vmatmul.mubr.bf16.vlgmr.msra.gmra.mxu1 %v891_v11 }
  0x3e   :  { %831 = vmatprep.mubr.bf16.mxu0 %v892_v12  ;;  %847 = vmatprep.mubr.bf16.mxu1 %v893_v13 }
  0x45   :  { %832 = vmatmul.mubr.bf16.gmra.mxu0 %v894_v14  ;;  %848 = vmatmul.mubr.bf16.gmra.mxu1 %v895_v15 }
  0x46   :  { %835 = vmatprep.mubr.bf16.mxu0 %v896_v16  ;;  %851 = vmatprep.mubr.bf16.mxu1 %v897_v17 }
  0x4d   :  { %836 = vmatmul.mubr.bf16.gmra.mxu0 %v898_v18  ;;  %852 = vmatmul.mubr.bf16.gmra.mxu1 %v899_v19 }
  0x4e   :  { %839 = vmatprep.mubr.bf16.mxu0 %v900_v20  ;;  %855 = vmatprep.mubr.bf16.mxu1 %v901_v21 }
  0x55   :  { %840 = vmatmul.mubr.bf16.gmra.mxu0 %v902_v22  ;;  %856 = vmatmul.mubr.bf16.gmra.mxu1 %v903_v23 }
  0xfd   :  { %v829_v24 = vpop.f32.mrf.mxu0  ;;  %v845_v25 = vpop.f32.mrf.mxu1 }
  0xfe   :  { %v396_v30 = vmax.f32 %v829_v24, 0.0  ;;  %v412_v31 = vmax.f32 %v845_v25, 0.0 }
  0xff   :  { %v267_v26 = vpop.f32.mrf.mxu0  ;;  %v331_v27 = vpop.f32.mrf.mxu1 }
 0x100   :  { %v394_v34 = vmax.f32 %v267_v26, 0.0  ;;  %v410_v35 = vmax.f32 %v331_v27, 0.0 }
 0x101   :  { %v830_v28 = vpop.f32.mrf.mxu0  ;;  %v846_v29 = vpop.f32.mrf.mxu1 }
 0x102   :  { %v397_v32 = vmax.f32 %v830_v28, 0.0  ;;  %v413_v33 = vmax.f32 %v846_v29, 0.0 }
 0x103   :  { %v270_v36 = vpop.f32.mrf.mxu0  ;;  %v334_v37 = vpop.f32.mrf.mxu1 }
 0x104   :  { %v700_v38 = vpack.c.bf16 %v397_v32, %v396_v30  ;;  %v740_v39 = vpack.c.bf16 %v413_v33, %v412_v31  ;;  %v395_v40 = vmax.f32 %v270_v36, 0.0  ;;  %v411_v41 = vmax.f32 %v334_v37, 0.0 }
 0x105   :  { %v833_v42 = vpop.f32.mrf.mxu0  ;;  %v849_v43 = vpop.f32.mrf.mxu1 }
 0x106   :  { %772 = vst [vmem:[#allocation7 + $0x8] sm:$0xff] %v700_v38   ;;  %780 = vst [vmem:[#allocation7 + $0x48] sm:$0xff] %v740_v39   ;;  %v695_v44 = vpack.c.bf16 %v395_v40, %v394_v34  ;;  %v735_v45 = vpack.c.bf16 %v411_v41, %v410_v35  ;;  %v400_v50 = vmax.f32 %v833_v42, 0.0  ;;  %v416_v51 = vmax.f32 %v849_v43, 0.0 }
 0x107   :  { %v283_v46 = vpop.f32.mrf.mxu0  ;;  %v347_v47 = vpop.f32.mrf.mxu1 }
 0x108   :  { %696 = vst [vmem:[#allocation7] sm:$0xff] %v695_v44   ;;  %779 = vst [vmem:[#allocation7 + $0x40] sm:$0xff] %v735_v45   ;;  %v398_v54 = vmax.f32 %v283_v46, 0.0  ;;  %v414_v55 = vmax.f32 %v347_v47, 0.0 }
 0x109   :  { %v834_v48 = vpop.f32.mrf.mxu0  ;;  %v850_v49 = vpop.f32.mrf.mxu1 }
 0x10a   :  { %v401_v52 = vmax.f32 %v834_v48, 0.0  ;;  %v417_v53 = vmax.f32 %v850_v49, 0.0 }
 0x10b   :  { %v286_v56 = vpop.f32.mrf.mxu0  ;;  %v350_v57 = vpop.f32.mrf.mxu1 }
 0x10c   :  { %v710_v58 = vpack.c.bf16 %v401_v52, %v400_v50  ;;  %v750_v59 = vpack.c.bf16 %v417_v53, %v416_v51  ;;  %v399_v60 = vmax.f32 %v286_v56, 0.0  ;;  %v415_v61 = vmax.f32 %v350_v57, 0.0 }
 0x10d   :  { %v837_v62 = vpop.f32.mrf.mxu0  ;;  %v853_v63 = vpop.f32.mrf.mxu1 }
 0x10e   :  { %774 = vst [vmem:[#allocation7 + $0x18] sm:$0xff] %v710_v58   ;;  %782 = vst [vmem:[#allocation7 + $0x58] sm:$0xff] %v750_v59   ;;  %v705_v0 = vpack.c.bf16 %v399_v60, %v398_v54  ;;  %v745_v1 = vpack.c.bf16 %v415_v61, %v414_v55  ;;  %v404_v6 = vmax.f32 %v837_v62, 0.0  ;;  %v420_v7 = vmax.f32 %v853_v63, 0.0 }
 0x10f   :  { %v299_v2 = vpop.f32.mrf.mxu0  ;;  %v363_v3 = vpop.f32.mrf.mxu1 }
 0x110   :  { %773 = vst [vmem:[#allocation7 + $0x10] sm:$0xff] %v705_v0   ;;  %781 = vst [vmem:[#allocation7 + $0x50] sm:$0xff] %v745_v1   ;;  %v402_v10 = vmax.f32 %v299_v2, 0.0  ;;  %v418_v11 = vmax.f32 %v363_v3, 0.0 }
 0x111   :  { %v838_v4 = vpop.f32.mrf.mxu0  ;;  %v854_v5 = vpop.f32.mrf.mxu1 }
 0x112   :  { %v405_v8 = vmax.f32 %v838_v4, 0.0  ;;  %v421_v9 = vmax.f32 %v854_v5, 0.0 }
 0x113   :  { %v302_v12 = vpop.f32.mrf.mxu0  ;;  %v366_v13 = vpop.f32.mrf.mxu1 }
 0x114   :  { %v720_v14 = vpack.c.bf16 %v405_v8, %v404_v6  ;;  %v760_v15 = vpack.c.bf16 %v421_v9, %v420_v7  ;;  %v403_v16 = vmax.f32 %v302_v12, 0.0  ;;  %v419_v17 = vmax.f32 %v366_v13, 0.0 }
 0x115   :  { %v841_v18 = vpop.f32.mrf.mxu0  ;;  %v857_v19 = vpop.f32.mrf.mxu1 }
 0x116   :  { %776 = vst [vmem:[#allocation7 + $0x28] sm:$0xff] %v720_v14   ;;  %784 = vst [vmem:[#allocation7 + $0x68] sm:$0xff] %v760_v15   ;;  %v715_v20 = vpack.c.bf16 %v403_v16, %v402_v10  ;;  %v755_v21 = vpack.c.bf16 %v419_v17, %v418_v11  ;;  %v408_v26 = vmax.f32 %v841_v18, 0.0  ;;  %v424_v27 = vmax.f32 %v857_v19, 0.0 }
 0x117   :  { %v315_v22 = vpop.f32.mrf.mxu0  ;;  %v379_v23 = vpop.f32.mrf.mxu1 }
 0x118   :  { %775 = vst [vmem:[#allocation7 + $0x20] sm:$0xff] %v715_v20   ;;  %783 = vst [vmem:[#allocation7 + $0x60] sm:$0xff] %v755_v21   ;;  %v406_v30 = vmax.f32 %v315_v22, 0.0  ;;  %v422_v31 = vmax.f32 %v379_v23, 0.0 }
 0x119   :  { %v842_v24 = vpop.f32.mrf.mxu0  ;;  %v858_v25 = vpop.f32.mrf.mxu1 }
 0x11a   :  { %v409_v28 = vmax.f32 %v842_v24, 0.0  ;;  %v425_v29 = vmax.f32 %v858_v25, 0.0 }
 0x11b   :  { %v318_v32 = vpop.f32.mrf.mxu0  ;;  %v382_v33 = vpop.f32.mrf.mxu1 }
 0x11c   :  { %v730_v34 = vpack.c.bf16 %v409_v28, %v408_v26  ;;  %v770_v35 = vpack.c.bf16 %v425_v29, %v424_v27  ;;  %v407_v36 = vmax.f32 %v318_v32, 0.0  ;;  %v423_v37 = vmax.f32 %v382_v33, 0.0 }
 0x11e   :  { %778 = vst [vmem:[#allocation7 + $0x38] sm:$0xff] %v730_v34   ;;  %786 = vst [vmem:[#allocation7 + $0x78] sm:$0xff] %v770_v35   ;;  %v725_v38 = vpack.c.bf16 %v407_v36, %v406_v30  ;;  %v765_v39 = vpack.c.bf16 %v423_v37, %v422_v31 }
 0x120   :  { %777 = vst [vmem:[#allocation7 + $0x30] sm:$0xff] %v725_v38   ;;  %785 = vst [vmem:[#allocation7 + $0x70] sm:$0xff] %v765_v39  }
 0x121   :  { %955 = shalt.err (!%p952_p0)
}
 0x122   :  { %597 = dma.vmem_to_hbm [thread:$0]  %s592_s1, 2048, %s1010_s2, [#allocation4], %s971_s12, %s971_s12, %s972_s13  }
 0x123   :  { %968 = dma.done.wait [#allocation4], 2048  }
 0x124   :  { %969 = vsyncadd [#allocation4], 4294965248 }
 0x125   :  { %601 = vsyncpa [#allocation3], 1 }
 0x126   :  { %602 = vsyncpa [#allocation6], 1 }
 0x127   :  { %603 = vsyncpa [#allocation4], 1 }

</bundles_post_ra>
